<compile_context>
chip_gen: v6e
topology: v6e:2x2x1
jax: 0.10.0
libtpu: 0.0.40
codegen_flags: <defaults>
</compile_context>

<pallas_src>
import jax
import jax.numpy as jnp
from jax.experimental import pallas as pl
from jax.experimental.pallas import tpu as pltpu


def _round_up(a: int, b: int) -> int:
    return (a + b - 1) // b * b


def residual_ff_kernel(x_ref, w1_ref, b1_ref, w2_ref, b2_ref, o_ref, acc_ref):
    """One (tile_m, Dp) row tile; grid axis 1 reduces over tiles of the hidden dim."""
    k = pl.program_id(1)

    @pl.when(k == 0)
    def _init():
        acc_ref[...] = jnp.zeros_like(acc_ref)

    # Feed the MXU the native dtype (bf16 in real models); accumulate in f32.
    x = x_ref[...]
    h = jnp.dot(x, w1_ref[...], preferred_element_type=jnp.float32)
    h = h + b1_ref[...].astype(jnp.float32)
    h = jax.nn.gelu(h, approximate=True)              # tanh -> EUP slot
    acc_ref[...] += jnp.dot(h.astype(w2_ref.dtype), w2_ref[...],
                            preferred_element_type=jnp.float32)

    @pl.when(k == pl.num_programs(1) - 1)
    def _finalize():
        y = acc_ref[...] + b2_ref[...].astype(jnp.float32) + x.astype(jnp.float32)
        o_ref[...] = y.astype(o_ref.dtype)


def _spec(shape, index_map, mode=None):
    if mode is None:
        return pl.BlockSpec(shape, index_map)
    return pl.BlockSpec(shape, index_map, pipeline_mode=mode)


def residual_feedforward(x, w1, b1, w2, b2, *, tile_m=512, tile_h=512):
    """x: (M, D). Returns fn(x) + x with fn = Linear->GELU->Linear, fused in Pallas."""
    M, D = x.shape
    D2, H = w1.shape
    assert D2 == D and w2.shape == (H, D) and b1.shape == (H,) and b2.shape == (D,)

    # Lane-dense feature dims (multiples of 128); row tiles multiples of 8.
    Dp = _round_up(D, 128)
    Hp = _round_up(H, 128)
    tile_m = max(8, min(_round_up(tile_m, 8), _round_up(M, 8)))
    tile_h = max(128, min(_round_up(tile_h, 128), Hp))
    Mp = _round_up(M, tile_m)
    Hp = _round_up(Hp, tile_h)
    n_m = Mp // tile_m
    n_k = Hp // tile_h

    # Zero-pad: padded rows/cols contribute nothing (gelu(0)=0, zero weight rows/cols).
    xp = jnp.pad(x, ((0, Mp - M), (0, Dp - D)))
    w1p = jnp.pad(w1, ((0, Dp - D), (0, Hp - H)))
    b1p = jnp.pad(b1, (0, Hp - H)).reshape(1, Hp)
    w2p = jnp.pad(w2, ((0, Hp - H), (0, Dp - D)))
    b2p = jnp.pad(b2, (0, Dp - D)).reshape(1, Dp)

    # Explicit VMEM budget (v5e default scoped limit is only 16 MiB; cap for v7x 64 MiB).
    itm, wtm = x.dtype.itemsize, w1.dtype.itemsize
    nbuf_w = 2 if n_k > 1 else 1
    est = (
        4 * tile_m * Dp * itm                               # x + out tiles, double-buffered
        + tile_m * Dp * 4                                   # f32 accumulator scratch
        + nbuf_w * (Dp * tile_h + tile_h * Dp) * wtm        # w1 + w2 tiles
        + nbuf_w * tile_h * b1.dtype.itemsize + Dp * b2.dtype.itemsize
        + tile_m * tile_h * 4                               # hidden intermediate
    )
    vmem_limit = min(64 * 1024 * 1024, max(32 * 1024 * 1024, int(est * 1.5)))

    def call(single_buffer_consts: bool):
        const_mode = pl.Buffered(1) if single_buffer_consts else None
        w_mode = const_mode if n_k == 1 else None  # weights stream over k otherwise
        grid_spec = pltpu.PrefetchScalarGridSpec(
            num_scalar_prefetch=0,
            grid=(n_m, n_k),
            in_specs=[
                _spec((tile_m, Dp), lambda i, k: (i, 0)),           # x rows
                _spec((Dp, tile_h), lambda i, k: (0, k), w_mode),   # w1
                _spec((1, tile_h), lambda i, k: (0, k), w_mode),    # b1
                _spec((tile_h, Dp), lambda i, k: (k, 0), w_mode),   # w2
                _spec((1, Dp), lambda i, k: (0, 0), const_mode),    # b2
            ],
            out_specs=pl.BlockSpec((tile_m, Dp), lambda i, k: (i, 0)),
            scratch_shapes=[pltpu.VMEM((tile_m, Dp), jnp.float32)],
        )
        return pl.pallas_call(
            residual_ff_kernel,
            out_shape=jax.ShapeDtypeStruct((Mp, Dp), x.dtype),
            grid_spec=grid_spec,
            compiler_params=pltpu.CompilerParams(
                dimension_semantics=("parallel", "arbitrary"),
                vmem_limit_bytes=vmem_limit,
            ),
        )(xp, w1p, b1p, w2p, b2p)

    try:
        out = call(True)
    except Exception:
        # Fallback if this JAX/Mosaic build rejects single-buffered BlockSpecs.
        out = call(False)

    return out[:M, :D]


def reference(x, w1, b1, w2, b2):
    h = jax.nn.gelu(x @ w1 + b1, approximate=True)
    return h @ w2 + b2 + x


if __name__ == "__main__":
    key = jax.random.PRNGKey(0)
    batch, seq, dim, hidden = 2, 8, 32, 256

    k1, k2, k3, k4, k5 = jax.random.split(key, 5)
    x = jax.random.normal(k1, (batch, seq, dim), dtype=jnp.float32)
    # Deterministic synthetic parameters for fn = FeedForward(dim, hidden)
    w1 = jax.random.normal(k2, (dim, hidden), dtype=jnp.float32) * 0.05
    b1 = jax.random.normal(k3, (hidden,), dtype=jnp.float32) * 0.01
    w2 = jax.random.normal(k4, (hidden, dim), dtype=jnp.float32) * 0.05
    b2 = jax.random.normal(k5, (dim,), dtype=jnp.float32) * 0.01

    x2d = x.reshape(batch * seq, dim)
    ref = reference(x2d, w1, b1, w2, b2)

    # Path 1: whole hidden dim resident in VMEM (single k step, weights single-buffered).
    out1 = jax.block_until_ready(residual_feedforward(x2d, w1, b1, w2, b2))
    assert out1.shape == (batch * seq, dim)
    assert jnp.allclose(out1, ref, atol=2e-3, rtol=2e-3), "mismatch vs reference (path 1)"

    # Path 2: force H-reduction grid axis (2 k-steps) and 2 row tiles.
    out2 = jax.block_until_ready(
        residual_feedforward(x2d, w1, b1, w2, b2, tile_m=8, tile_h=128))
    assert jnp.allclose(out2, ref, atol=2e-3, rtol=2e-3), "mismatch vs reference (path 2)"

    # reshape back to (batch, seq, dim) like the PyTorch module would return
    out3d = out1.reshape(batch, seq, dim)
    assert out3d.shape == x.shape

    print("KERNEL_OK")
</pallas_src>

<mosaic_0001>
module attributes {stable_mosaic.version = 11 : i64} {
  func.func @residual_ff_kernel(%arg0: i32, %arg1: i32, %arg2: memref<16x128xf32, #tpu.memory_space<vmem>>, %arg3: memref<128x256xf32, #tpu.memory_space<vmem>>, %arg4: memref<1x256xf32, #tpu.memory_space<vmem>>, %arg5: memref<256x128xf32, #tpu.memory_space<vmem>>, %arg6: memref<1x128xf32, #tpu.memory_space<vmem>>, %arg7: memref<16x128xf32, #tpu.memory_space<vmem>>, %arg8: memref<16x128xf32, #tpu.memory_space<vmem>>) attributes {dimension_semantics = [#tpu.dimension_semantics<parallel>, #tpu.dimension_semantics<arbitrary>], iteration_bounds = array<i64: 1, 1>, scalar_prefetch = 0 : i64, scratch_operands = 1 : i64, tpu.core_type = #tpu.core_type<tc>, window_params = [{transform_indices = @transform_0, window_bounds = array<i64: 16, 128>}, {pipeline_mode = #tpu.pipeline_mode<synchronous>, transform_indices = @transform_1, window_bounds = array<i64: 128, 256>}, {pipeline_mode = #tpu.pipeline_mode<synchronous>, transform_indices = @transform_2, window_bounds = array<i64: 1, 256>}, {pipeline_mode = #tpu.pipeline_mode<synchronous>, transform_indices = @transform_3, window_bounds = array<i64: 256, 128>}, {pipeline_mode = #tpu.pipeline_mode<synchronous>, transform_indices = @transform_4, window_bounds = array<i64: 1, 128>}, {transform_indices = @transform_5, window_bounds = array<i64: 16, 128>}]} {
    %c0_i32 = arith.constant 0 : i32
    %0 = arith.cmpi eq, %arg1, %c0_i32 : i32
    %1 = arith.extui %0 : i1 to i32
    %c0_i32_0 = arith.constant 0 : i32
    %2 = arith.cmpi ne, %1, %c0_i32_0 : i32
    scf.if %2 {
      %cst_19 = arith.constant 0.000000e+00 : f32
      %30 = vector.broadcast %cst_19 : f32 to vector<16x128xf32>
      %c0_20 = arith.constant 0 : index
      %c0_21 = arith.constant 0 : index
      %31 = vector.load %arg8[%c0_20, %c0_21] : memref<16x128xf32, #tpu.memory_space<vmem>>, vector<16x128xf32>
      tpu.vector_store %arg8[%c0_20, %c0_21], %30 {strides = array<i32>} : memref<16x128xf32, #tpu.memory_space<vmem>>, vector<16x128xf32>,
    } else {
    }
    %c0 = arith.constant 0 : index
    %c0_1 = arith.constant 0 : index
    %3 = vector.load %arg2[%c0, %c0_1] : memref<16x128xf32, #tpu.memory_space<vmem>>, vector<16x128xf32>
    %c0_2 = arith.constant 0 : index
    %c0_3 = arith.constant 0 : index
    %4 = vector.load %arg3[%c0_2, %c0_3] : memref<128x256xf32, #tpu.memory_space<vmem>>, vector<128x256xf32>
    %cst = arith.constant dense<0.000000e+00> : vector<16x256xf32>
    %5 = tpu.matmul %3, %4, %cst {dimension_numbers = #tpu.dot_dimension_numbers<[1], [0], [0], [1], [0, 0, 1, 1], [], []>} : vector<16x128xf32>, vector<128x256xf32>, vector<16x256xf32> -> vector<16x256xf32>
    %c0_4 = arith.constant 0 : index
    %c0_5 = arith.constant 0 : index
    %6 = vector.load %arg4[%c0_4, %c0_5] : memref<1x256xf32, #tpu.memory_space<vmem>>, vector<1x256xf32>
    %7 = vector.broadcast %6 : vector<1x256xf32> to vector<16x256xf32>
    %8 = arith.addf %5, %7 : vector<16x256xf32>
    %9 = arith.mulf %8, %8 : vector<16x256xf32>
    %10 = arith.mulf %8, %9 : vector<16x256xf32>
    %cst_6 = arith.constant 4.471500e-02 : f32
    %11 = vector.broadcast %cst_6 : f32 to vector<16x256xf32>
    %12 = arith.mulf %11, %10 : vector<16x256xf32>
    %13 = arith.addf %8, %12 : vector<16x256xf32>
    %cst_7 = arith.constant 0.797884583 : f32
    %14 = vector.broadcast %cst_7 : f32 to vector<16x256xf32>
    %15 = arith.mulf %14, %13 : vector<16x256xf32>
    %16 = math.tanh %15 : vector<16x256xf32>
    %cst_8 = arith.constant 1.000000e+00 : f32
    %17 = vector.broadcast %cst_8 : f32 to vector<16x256xf32>
    %18 = arith.addf %17, %16 : vector<16x256xf32>
    %cst_9 = arith.constant 5.000000e-01 : f32
    %19 = vector.broadcast %cst_9 : f32 to vector<16x256xf32>
    %20 = arith.mulf %19, %18 : vector<16x256xf32>
    %21 = arith.mulf %8, %20 : vector<16x256xf32>
    %c0_10 = arith.constant 0 : index
    %c0_11 = arith.constant 0 : index
    %22 = vector.load %arg8[%c0_10, %c0_11] : memref<16x128xf32, #tpu.memory_space<vmem>>, vector<16x128xf32>
    %c0_12 = arith.constant 0 : index
    %c0_13 = arith.constant 0 : index
    %23 = vector.load %arg5[%c0_12, %c0_13] : memref<256x128xf32, #tpu.memory_space<vmem>>, vector<256x128xf32>
    %cst_14 = arith.constant dense<0.000000e+00> : vector<16x128xf32>
    %24 = tpu.matmul %21, %23, %cst_14 {dimension_numbers = #tpu.dot_dimension_numbers<[1], [0], [0], [1], [0, 0, 1, 1], [], []>} : vector<16x256xf32>, vector<256x128xf32>, vector<16x128xf32> -> vector<16x128xf32>
    %25 = arith.addf %22, %24 : vector<16x128xf32>
    %c0_15 = arith.constant 0 : index
    %c0_16 = arith.constant 0 : index
    %26 = vector.load %arg8[%c0_15, %c0_16] : memref<16x128xf32, #tpu.memory_space<vmem>>, vector<16x128xf32>
    tpu.vector_store %arg8[%c0_15, %c0_16], %25 {strides = array<i32>} : memref<16x128xf32, #tpu.memory_space<vmem>>, vector<16x128xf32>,
    %c0_i32_17 = arith.constant 0 : i32
    %27 = arith.cmpi eq, %arg1, %c0_i32_17 : i32
    %28 = arith.extui %27 : i1 to i32
    %c0_i32_18 = arith.constant 0 : i32
    %29 = arith.cmpi ne, %28, %c0_i32_18 : i32
    scf.if %29 {
      %c0_19 = arith.constant 0 : index
      %c0_20 = arith.constant 0 : index
      %30 = vector.load %arg8[%c0_19, %c0_20] : memref<16x128xf32, #tpu.memory_space<vmem>>, vector<16x128xf32>
      %c0_21 = arith.constant 0 : index
      %c0_22 = arith.constant 0 : index
      %31 = vector.load %arg6[%c0_21, %c0_22] : memref<1x128xf32, #tpu.memory_space<vmem>>, vector<1x128xf32>
      %32 = vector.broadcast %31 : vector<1x128xf32> to vector<16x128xf32>
      %33 = arith.addf %30, %32 : vector<16x128xf32>
      %34 = arith.addf %33, %3 : vector<16x128xf32>
      %c0_23 = arith.constant 0 : index
      %c0_24 = arith.constant 0 : index
      %35 = vector.load %arg7[%c0_23, %c0_24] : memref<16x128xf32, #tpu.memory_space<vmem>>, vector<16x128xf32>
      tpu.vector_store %arg7[%c0_23, %c0_24], %34 {strides = array<i32>} : memref<16x128xf32, #tpu.memory_space<vmem>>, vector<16x128xf32>,
    } else {
    }
    return
  }
  func.func @transform_0(%arg0: i32, %arg1: i32) -> (i32, i32) {
    %c0_i32 = arith.constant 0 : i32
    %c0_i32_0 = arith.constant 0 : i32
    return %arg0, %c0_i32 : i32, i32
  }
  func.func @transform_1(%arg0: i32, %arg1: i32) -> (i32, i32) {
    %c0_i32 = arith.constant 0 : i32
    %c0_i32_0 = arith.constant 0 : i32
    return %c0_i32, %arg1 : i32, i32
  }
  func.func @transform_2(%arg0: i32, %arg1: i32) -> (i32, i32) {
    %c0_i32 = arith.constant 0 : i32
    %c0_i32_0 = arith.constant 0 : i32
    return %c0_i32, %arg1 : i32, i32
  }
  func.func @transform_3(%arg0: i32, %arg1: i32) -> (i32, i32) {
    %c0_i32 = arith.constant 0 : i32
    %c0_i32_0 = arith.constant 0 : i32
    return %arg1, %c0_i32 : i32, i32
  }
  func.func @transform_4(%arg0: i32, %arg1: i32) -> (i32, i32) {
    %c0_i32 = arith.constant 0 : i32
    %c0_i32_0 = arith.constant 0 : i32
    %c0_i32_1 = arith.constant 0 : i32
    return %c0_i32, %c0_i32_0 : i32, i32
  }
  func.func @transform_5(%arg0: i32, %arg1: i32) -> (i32, i32) {
    %c0_i32 = arith.constant 0 : i32
    %c0_i32_0 = arith.constant 0 : i32
    return %arg0, %c0_i32 : i32, i32
  }
}

module attributes {stable_mosaic.version = 11 : i64} {
  func.func @residual_ff_kernel(%arg0: i32, %arg1: i32, %arg2: memref<16x128xf32, #tpu.memory_space<vmem>>, %arg3: memref<128x256xf32, #tpu.memory_space<vmem>>, %arg4: memref<1x256xf32, #tpu.memory_space<vmem>>, %arg5: memref<256x128xf32, #tpu.memory_space<vmem>>, %arg6: memref<1x128xf32, #tpu.memory_space<vmem>>, %arg7: memref<16x128xf32, #tpu.memory_space<vmem>>, %arg8: memref<16x128xf32, #tpu.memory_space<vmem>>) attributes {dimension_semantics = [#tpu.dimension_semantics<parallel>, #tpu.dimension_semantics<arbitrary>], iteration_bounds = array<i64: 1, 1>, scalar_prefetch = 0 : i64, scratch_operands = 1 : i64, tpu.core_type = #tpu.core_type<tc>, window_params = [{transform_indices = @transform_0, window_bounds = array<i64: 16, 128>}, {transform_indices = @transform_1, window_bounds = array<i64: 128, 256>}, {transform_indices = @transform_2, window_bounds = array<i64: 1, 256>}, {transform_indices = @transform_3, window_bounds = array<i64: 256, 128>}, {pipeline_mode = #tpu.pipeline_mode<synchronous>, transform_indices = @transform_4, window_bounds = array<i64: 1, 128>}, {transform_indices = @transform_5, window_bounds = array<i64: 16, 128>}]} {
    %c0_i32 = arith.constant 0 : i32
    %0 = arith.cmpi eq, %arg1, %c0_i32 : i32
    %1 = arith.extui %0 : i1 to i32
    %c0_i32_0 = arith.constant 0 : i32
    %2 = arith.cmpi ne, %1, %c0_i32_0 : i32
    scf.if %2 {
      %cst_19 = arith.constant 0.000000e+00 : f32
      %30 = vector.broadcast %cst_19 : f32 to vector<16x128xf32>
      %c0_20 = arith.constant 0 : index
      %c0_21 = arith.constant 0 : index
      %31 = vector.load %arg8[%c0_20, %c0_21] : memref<16x128xf32, #tpu.memory_space<vmem>>, vector<16x128xf32>
      tpu.vector_store %arg8[%c0_20, %c0_21], %30 {strides = array<i32>} : memref<16x128xf32, #tpu.memory_space<vmem>>, vector<16x128xf32>,
    } else {
    }
    %c0 = arith.constant 0 : index
    %c0_1 = arith.constant 0 : index
    %3 = vector.load %arg2[%c0, %c0_1] : memref<16x128xf32, #tpu.memory_space<vmem>>, vector<16x128xf32>
    %c0_2 = arith.constant 0 : index
    %c0_3 = arith.constant 0 : index
    %4 = vector.load %arg3[%c0_2, %c0_3] : memref<128x256xf32, #tpu.memory_space<vmem>>, vector<128x256xf32>
    %cst = arith.constant dense<0.000000e+00> : vector<16x256xf32>
    %5 = tpu.matmul %3, %4, %cst {dimension_numbers = #tpu.dot_dimension_numbers<[1], [0], [0], [1], [0, 0, 1, 1], [], []>} : vector<16x128xf32>, vector<128x256xf32>, vector<16x256xf32> -> vector<16x256xf32>
    %c0_4 = arith.constant 0 : index
    %c0_5 = arith.constant 0 : index
    %6 = vector.load %arg4[%c0_4, %c0_5] : memref<1x256xf32, #tpu.memory_space<vmem>>, vector<1x256xf32>
    %7 = vector.broadcast %6 : vector<1x256xf32> to vector<16x256xf32>
    %8 = arith.addf %5, %7 : vector<16x256xf32>
    %9 = arith.mulf %8, %8 : vector<16x256xf32>
    %10 = arith.mulf %8, %9 : vector<16x256xf32>
    %cst_6 = arith.constant 4.471500e-02 : f32
    %11 = vector.broadcast %cst_6 : f32 to vector<16x256xf32>
    %12 = arith.mulf %11, %10 : vector<16x256xf32>
    %13 = arith.addf %8, %12 : vector<16x256xf32>
    %cst_7 = arith.constant 0.797884583 : f32
    %14 = vector.broadcast %cst_7 : f32 to vector<16x256xf32>
    %15 = arith.mulf %14, %13 : vector<16x256xf32>
    %16 = math.tanh %15 : vector<16x256xf32>
    %cst_8 = arith.constant 1.000000e+00 : f32
    %17 = vector.broadcast %cst_8 : f32 to vector<16x256xf32>
    %18 = arith.addf %17, %16 : vector<16x256xf32>
    %cst_9 = arith.constant 5.000000e-01 : f32
    %19 = vector.broadcast %cst_9 : f32 to vector<16x256xf32>
    %20 = arith.mulf %19, %18 : vector<16x256xf32>
    %21 = arith.mulf %8, %20 : vector<16x256xf32>
    %c0_10 = arith.constant 0 : index
    %c0_11 = arith.constant 0 : index
    %22 = vector.load %arg8[%c0_10, %c0_11] : memref<16x128xf32, #tpu.memory_space<vmem>>, vector<16x128xf32>
    %c0_12 = arith.constant 0 : index
    %c0_13 = arith.constant 0 : index
    %23 = vector.load %arg5[%c0_12, %c0_13] : memref<256x128xf32, #tpu.memory_space<vmem>>, vector<256x128xf32>
    %cst_14 = arith.constant dense<0.000000e+00> : vector<16x128xf32>
    %24 = tpu.matmul %21, %23, %cst_14 {dimension_numbers = #tpu.dot_dimension_numbers<[1], [0], [0], [1], [0, 0, 1, 1], [], []>} : vector<16x256xf32>, vector<256x128xf32>, vector<16x128xf32> -> vector<16x128xf32>
    %25 = arith.addf %22, %24 : vector<16x128xf32>
    %c0_15 = arith.constant 0 : index
    %c0_16 = arith.constant 0 : index
    %26 = vector.load %arg8[%c0_15, %c0_16] : memref<16x128xf32, #tpu.memory_space<vmem>>, vector<16x128xf32>
    tpu.vector_store %arg8[%c0_15, %c0_16], %25 {strides = array<i32>} : memref<16x128xf32, #tpu.memory_space<vmem>>, vector<16x128xf32>,
    %c0_i32_17 = arith.constant 0 : i32
    %27 = arith.cmpi eq, %arg1, %c0_i32_17 : i32
    %28 = arith.extui %27 : i1 to i32
    %c0_i32_18 = arith.constant 0 : i32
    %29 = arith.cmpi ne, %28, %c0_i32_18 : i32
    scf.if %29 {
      %c0_19 = arith.constant 0 : index
      %c0_20 = arith.constant 0 : index
      %30 = vector.load %arg8[%c0_19, %c0_20] : memref<16x128xf32, #tpu.memory_space<vmem>>, vector<16x128xf32>
      %c0_21 = arith.constant 0 : index
      %c0_22 = arith.constant 0 : index
      %31 = vector.load %arg6[%c0_21, %c0_22] : memref<1x128xf32, #tpu.memory_space<vmem>>, vector<1x128xf32>
      %32 = vector.broadcast %31 : vector<1x128xf32> to vector<16x128xf32>
      %33 = arith.addf %30, %32 : vector<16x128xf32>
      %34 = arith.addf %33, %3 : vector<16x128xf32>
      %c0_23 = arith.constant 0 : index
      %c0_24 = arith.constant 0 : index
      %35 = vector.load %arg7[%c0_23, %c0_24] : memref<16x128xf32, #tpu.memory_space<vmem>>, vector<16x128xf32>
      tpu.vector_store %arg7[%c0_23, %c0_24], %34 {strides = array<i32>} : memref<16x128xf32, #tpu.memory_space<vmem>>, vector<16x128xf32>,
    } else {
    }
    return
  }
  func.func @transform_0(%arg0: i32, %arg1: i32) -> (i32, i32) {
    %c0_i32 = arith.constant 0 : i32
    %c0_i32_0 = arith.constant 0 : i32
    return %arg0, %c0_i32 : i32, i32
  }
  func.func @transform_1(%arg0: i32, %arg1: i32) -> (i32, i32) {
    %c0_i32 = arith.constant 0 : i32
    %c0_i32_0 = arith.constant 0 : i32
    return %c0_i32, %arg1 : i32, i32
  }
  func.func @transform_2(%arg0: i32, %arg1: i32) -> (i32, i32) {
    %c0_i32 = arith.constant 0 : i32
    %c0_i32_0 = arith.constant 0 : i32
    return %c0_i32, %arg1 : i32, i32
  }
  func.func @transform_3(%arg0: i32, %arg1: i32) -> (i32, i32) {
    %c0_i32 = arith.constant 0 : i32
    %c0_i32_0 = arith.constant 0 : i32
    return %arg1, %c0_i32 : i32, i32
  }
  func.func @transform_4(%arg0: i32, %arg1: i32) -> (i32, i32) {
    %c0_i32 = arith.constant 0 : i32
    %c0_i32_0 = arith.constant 0 : i32
    %c0_i32_1 = arith.constant 0 : i32
    return %c0_i32, %c0_i32_0 : i32, i32
  }
  func.func @transform_5(%arg0: i32, %arg1: i32) -> (i32, i32) {
    %c0_i32 = arith.constant 0 : i32
    %c0_i32_0 = arith.constant 0 : i32
    return %arg0, %c0_i32 : i32, i32
  }
}

</mosaic_0001>

<bundles_post_ra>
// kernel: tpu_custom_call.1
= control target key start
LH: loop header
LB: loop body
LE: loop exit
PB: predicated region body
PF: predicated region fallthrough
CT: control target
= control target key end

     0   :  { %10 = vsyncpa [#allocation4], 0  ;;  %s594_s0 = inlined_call_operand.hbm [shape: f32[16,128], index: 0, kind: input, shape index: {}]   ;;  %s595_s1 = inlined_call_operand.hbm [shape: f32[128,256], index: 1, kind: input, shape index: {}]   ;;  %s596_s2 = inlined_call_operand.vmem [shape: f32[1,256], index: 2, kind: input, shape index: {}]   ;;  %s597_s3 = inlined_call_operand.hbm [shape: f32[256,128], index: 3, kind: input, shape index: {}]   ;;  %s598_s4 = inlined_call_operand.vmem [shape: f32[1,128], index: 4, kind: input, shape index: {}]   ;;  %s599_s5 = inlined_call_operand.hbm [shape: f32[16,128], index: 5, kind: output, shape index: {}]  }
   0x1   :  { %11 = vsyncpa [#allocation7], 0 }
   0x2   :  { %12 = vsyncpa [#allocation5], 0  ;;  %s518_s18 = smov [#allocation6]  }
   0x3   :  { %s30_s19 = sshll.u32 %s518_s18, 4  ;;  %s31_s19 = int_to_ptr.vmem [resolvable:$true] %s30_s19 }
   0x4   :  { %s440_s20 = scalar_lea.vmem %s31_s19, 4096  ;;  %p445_p1 = scmp.lt.s32.totalorder %s31_s19, %s31_s19 }
   0x5   :  { %p441_p0 = scmp.ne.s32.totalorder %s31_s19, %s440_s20  ;;  %p446_p2 = scmp.lt.s32.totalorder %s440_s20, %s440_s20 }
   0x7   :  { %p447_p3 = por %p446_p2, %p445_p1 }
   0x9   :  { %p448_p4 = pnand %p447_p3, %p441_p0 }
   0xb   :  { %451 = shalt.err (!%p448_p4)
}
   0xc   :  { %s519_s21 = smov 256   ;;  %s520_s22 = smov 16  }
   0xd   :  { %36 = dma.hbm_to_vmem [thread:$0]  %s595_s1, 4096, %s31_s19, [#allocation7], %s519_s21, %s519_s21, %s520_s22  }
   0xe   :  { %s521_s25 = smov [#allocation3]  }
   0xf   :  { %s18_s26 = sshll.u32 %s521_s25, 4  ;;  %s19_s26 = int_to_ptr.vmem [resolvable:$true] %s18_s26 }
  0x10   :  { %s460_s27 = scalar_lea.vmem %s19_s26, 256  ;;  %p465_p6 = scmp.lt.s32.totalorder %s19_s26, %s19_s26 }
  0x11   :  { %p461_p5 = scmp.ne.s32.totalorder %s19_s26, %s460_s27  ;;  %p466_p7 = scmp.lt.s32.totalorder %s460_s27, %s460_s27 }
  0x13   :  { %p467_p8 = por %p466_p7, %p465_p6 }
  0x15   :  { %p468_p9 = pnand %p467_p8, %p461_p5 }
  0x17   :  { %471 = shalt.err (!%p468_p9)
}
  0x18   :  { %s522_s28 = smov 128   ;;  %s523_s29 = smov 8  }
  0x19   :  { %24 = dma.hbm_to_vmem [thread:$0]  %s594_s0, 256, %s19_s26, [#allocation4], %s522_s28, %s522_s28, %s523_s29  }
  0x1a   :  { %s524_s1 = smov [#allocation8]  }
  0x1b   :  { %s44_s7 = sshll.u32 %s524_s1, 4  ;;  %s45_s7 = int_to_ptr.vmem [resolvable:$true] %s44_s7 }
  0x1c   :  { %s480_s8 = scalar_lea.vmem %s45_s7, 4096  ;;  %p485_p11 = scmp.lt.s32.totalorder %s45_s7, %s45_s7 }
  0x1d   :  { %p481_p10 = scmp.ne.s32.totalorder %s45_s7, %s480_s8  ;;  %p486_p12 = scmp.lt.s32.totalorder %s480_s8, %s480_s8 }
  0x1f   :  { %p487_p13 = por %p486_p12, %p485_p11 }
  0x21   :  { %p488_p0 = pnand %p487_p13, %p481_p10 }
  0x23   :  { %491 = shalt.err (!%p488_p0)
}
  0x24   :  { %50 = dma.hbm_to_vmem [thread:$0]  %s597_s3, 4096, %s45_s7, [#allocation7], %s522_s28, %s522_s28, %s523_s29  }
  0x25   :  { %512 = dma.done.wait [#allocation4], 256  }
  0x26   :  { %513 = vsyncadd [#allocation4], 4294967040 }
  0x27   :  { %514 = dma.done.wait [#allocation7], 8192  }
  0x28   :  { %515 = vsyncadd [#allocation7], 4294959104  ;;  %v525_v0 = vmov 0.0   ;;  %v101_v1 = vld [vmem:[#allocation6 + $0xf8] sm:$0xff]  ;;  %v100_v2 = vld [vmem:[#allocation6 + $0xf0] sm:$0xff]  ;;  %s526_s12 = smov [#allocation9]  }
  0x29   :  { %178 = vmatprep.mubr.f32.mxu0 %v525_v0  ;;  %v99_v3 = vld [vmem:[#allocation6 + $0xe8] sm:$0xff]  ;;  %114 = vmatprep.subr.mxu0 %v101_v1  ;;  %v98_v4 = vld [vmem:[#allocation6 + $0xe0] sm:$0xff]  ;;  %v97_v5 = vld [vmem:[#allocation6 + $0xd8] sm:$0xff]  ;;  %s363_s13 = sshll.u32 %s526_s12, 4  ;;  %s364_s13 = int_to_ptr.vmem [resolvable:$true] %s363_s13 }
  0x2a   :  { %115 = vmatpush1.msra.mxu0 %v100_v2  ;;  %v96_v6 = vld [vmem:[#allocation6 + $0xd0] sm:$0xff]  ;;  %v95_v7 = vld [vmem:[#allocation6 + $0xc8] sm:$0xff]  ;;  %v94_v8 = vld [vmem:[#allocation6 + $0xc0] sm:$0xff]  ;;  %s492_s14 = scalar_lea.vmem %s364_s13, 256  ;;  %p497_p2 = scmp.lt.s32.totalorder %s364_s13, %s364_s13 }
  0x2b   :  { %116 = vmatprep.subr.mxu0 %v99_v3  ;;  %v93_v9 = vld [vmem:[#allocation6 + $0xb8] sm:$0xff]  ;;  %v92_v10 = vld [vmem:[#allocation6 + $0xb0] sm:$0xff]  ;;  %v91_v11 = vld [vmem:[#allocation6 + $0xa8] sm:$0xff]  ;;  %v104_v3 = vlaneseq  ;;  %p493_p1 = scmp.ne.s32.totalorder %s364_s13, %s492_s14  ;;  %p498_p3 = scmp.lt.s32.totalorder %s492_s14, %s492_s14 }
  0x2c   :  { %117 = vmatpush1.msra.mxu0 %v98_v4  ;;  %v90_v12 = vld [vmem:[#allocation6 + $0xa0] sm:$0xff]  ;;  %v89_v13 = vld [vmem:[#allocation6 + $0x98] sm:$0xff]  ;;  %v88_v14 = vld [vmem:[#allocation6 + $0x90] sm:$0xff] }
  0x2d   :  { %118 = vmatprep.subr.mxu0 %v97_v5  ;;  %v87_v15 = vld [vmem:[#allocation6 + $0x88] sm:$0xff]  ;;  %v86_v16 = vld [vmem:[#allocation6 + $0x80] sm:$0xff]  ;;  %v85_v17 = vld [vmem:[#allocation6 + $0x78] sm:$0xff]  ;;  %v105_v4 = vshrl.u32 %v104_v3, 7  ;;  %p499_p4 = por %p498_p3, %p497_p2 }
  0x2e   :  { %119 = vmatpush1.msra.mxu0 %v96_v6  ;;  %v84_v18 = vld [vmem:[#allocation6 + $0x70] sm:$0xff]  ;;  %v83_v19 = vld [vmem:[#allocation6 + $0x68] sm:$0xff]  ;;  %v82_v20 = vld [vmem:[#allocation6 + $0x60] sm:$0xff] }
  0x2f   :  { %120 = vmatprep.subr.mxu0 %v95_v7  ;;  %v81_v21 = vld [vmem:[#allocation6 + $0x58] sm:$0xff]  ;;  %v80_v22 = vld [vmem:[#allocation6 + $0x50] sm:$0xff]  ;;  %v79_v23 = vld [vmem:[#allocation6 + $0x48] sm:$0xff]  ;;  %v106_v5 = vsub.s32 0, %v105_v4  ;;  %v110_v7 = vsub.s32 1, %v105_v4  ;;  %p500_p5 = pnand %p499_p4, %p493_p1 }
  0x30   :  { %121 = vmatpush1.msra.mxu0 %v94_v8  ;;  %v78_v24 = vld [vmem:[#allocation6 + $0x40] sm:$0xff]  ;;  %v77_v25 = vld [vmem:[#allocation6 + $0x38] sm:$0xff]  ;;  %v76_v26 = vld [vmem:[#allocation6 + $0x30] sm:$0xff] }
  0x31   :  { %122 = vmatprep.subr.mxu0 %v93_v9  ;;  %v75_v27 = vld [vmem:[#allocation6 + $0x28] sm:$0xff]  ;;  %v74_v28 = vld [vmem:[#allocation6 + $0x20] sm:$0xff]  ;;  %v73_v29 = vld [vmem:[#allocation6 + $0x18] sm:$0xff] }
  0x32   :  { %123 = vmatpush1.msra.mxu0 %v92_v10  ;;  %v72_v30 = vld [vmem:[#allocation6 + $0x10] sm:$0xff]  ;;  %v71_v31 = vld [vmem:[#allocation6 + $0x8] sm:$0xff]  ;;  %v70_v32 = vld [vmem:[#allocation6] sm:$0xff] }
  0x33   :  { %124 = vmatprep.subr.mxu0 %v91_v11  ;;  %v573_v33 = vld [vmem:[#allocation3] sm:$0xff]  ;;  %v577_v34 = vld [vmem:[#allocation3 + $0x8] sm:$0xff]  ;;  %v258_v39 = vld [vmem:[#allocation8 + $0xe8] sm:$0xff] }
  0x34   :  { %125 = vmatpush1.msra.mxu0 %v90_v12  ;;  %v260_v35 = vld [vmem:[#allocation8 + $0xf8] sm:$0xff]  ;;  %v259_v37 = vld [vmem:[#allocation8 + $0xf0] sm:$0xff]  ;;  %v242_v40 = vld [vmem:[#allocation8 + $0x68] sm:$0xff] }
  0x35   :  { %126 = vmatprep.subr.mxu0 %v89_v13  ;;  %377 = vmatprep.subr.mxu1 %v260_v35  ;;  %v244_v36 = vld [vmem:[#allocation8 + $0x78] sm:$0xff]  ;;  %v243_v38 = vld [vmem:[#allocation8 + $0x70] sm:$0xff]  ;;  %v257_v41 = vld [vmem:[#allocation8 + $0xe0] sm:$0xff] }
  0x36   :  { %127 = vmatpush1.msra.mxu0 %v88_v14  ;;  %378 = vmatpush3.msra.mxu1 %v244_v36  ;;  %v241_v42 = vld [vmem:[#allocation8 + $0x60] sm:$0xff]  ;;  %v256_v43 = vld [vmem:[#allocation8 + $0xd8] sm:$0xff]  ;;  %v255_v45 = vld [vmem:[#allocation8 + $0xd0] sm:$0xff] }
  0x37   :  { %128 = vmatprep.subr.mxu0 %v87_v15  ;;  %379 = vmatprep.subr.mxu1 %v259_v37  ;;  %v240_v44 = vld [vmem:[#allocation8 + $0x58] sm:$0xff]  ;;  %v239_v46 = vld [vmem:[#allocation8 + $0x50] sm:$0xff]  ;;  %v254_v47 = vld [vmem:[#allocation8 + $0xc8] sm:$0xff] }
  0x38   :  { %129 = vmatpush1.msra.mxu0 %v86_v16  ;;  %380 = vmatpush3.msra.mxu1 %v243_v38  ;;  %v238_v48 = vld [vmem:[#allocation8 + $0x48] sm:$0xff]  ;;  %v253_v49 = vld [vmem:[#allocation8 + $0xc0] sm:$0xff]  ;;  %v252_v51 = vld [vmem:[#allocation8 + $0xb8] sm:$0xff] }
  0x39   :  { %130 = vmatprep.subr.mxu0 %v85_v17  ;;  %381 = vmatprep.subr.mxu1 %v258_v39  ;;  %v237_v50 = vld [vmem:[#allocation8 + $0x40] sm:$0xff]  ;;  %v236_v52 = vld [vmem:[#allocation8 + $0x38] sm:$0xff]  ;;  %v251_v53 = vld [vmem:[#allocation8 + $0xb0] sm:$0xff] }
  0x3a   :  { %131 = vmatpush1.msra.mxu0 %v84_v18  ;;  %382 = vmatpush3.msra.mxu1 %v242_v40  ;;  %v235_v54 = vld [vmem:[#allocation8 + $0x30] sm:$0xff]  ;;  %v250_v55 = vld [vmem:[#allocation8 + $0xa8] sm:$0xff]  ;;  %v249_v57 = vld [vmem:[#allocation8 + $0xa0] sm:$0xff] }
  0x3b   :  { %132 = vmatprep.subr.mxu0 %v83_v19  ;;  %383 = vmatprep.subr.mxu1 %v257_v41  ;;  %v234_v56 = vld [vmem:[#allocation8 + $0x28] sm:$0xff]  ;;  %v233_v58 = vld [vmem:[#allocation8 + $0x20] sm:$0xff]  ;;  %v248_v59 = vld [vmem:[#allocation8 + $0x98] sm:$0xff] }
  0x3c   :  { %133 = vmatpush1.msra.mxu0 %v82_v20  ;;  %384 = vmatpush3.msra.mxu1 %v241_v42  ;;  %v232_v60 = vld [vmem:[#allocation8 + $0x18] sm:$0xff]  ;;  %v247_v61 = vld [vmem:[#allocation8 + $0x90] sm:$0xff]  ;;  %v246_v63 = vld [vmem:[#allocation8 + $0x88] sm:$0xff] }
  0x3d   :  { %134 = vmatprep.subr.mxu0 %v81_v21  ;;  %385 = vmatprep.subr.mxu1 %v256_v43  ;;  %v231_v62 = vld [vmem:[#allocation8 + $0x10] sm:$0xff]  ;;  %v245_v1 = vld [vmem:[#allocation8 + $0x80] sm:$0xff] }
  0x3e   :  { %135 = vmatpush1.msra.mxu0 %v80_v22  ;;  %386 = vmatpush3.msra.mxu1 %v240_v44  ;;  %v229_v2 = vld [vmem:[#allocation8] sm:$0xff]  ;;  %v102_v6 = vld [vmem:[%s596_s2] sm:$0x3] }
  0x3f   :  { %136 = vmatprep.subr.mxu0 %v79_v23  ;;  %387 = vmatprep.subr.mxu1 %v255_v45  ;;  %v107_v8 = vrot.slane %v102_v6, %v106_v5  ;;  %v111_v9 = vrot.slane %v102_v6, %v110_v7 }
  0x40   :  { %137 = vmatpush1.msra.mxu0 %v78_v24  ;;  %388 = vmatpush3.msra.mxu1 %v239_v46 }
  0x41   :  { %138 = vmatprep.subr.mxu0 %v77_v25  ;;  %389 = vmatprep.subr.mxu1 %v254_v47 }
  0x42   :  { %139 = vmatpush1.msra.mxu0 %v76_v26  ;;  %390 = vmatpush3.msra.mxu1 %v238_v48 }
  0x43   :  { %140 = vmatprep.subr.mxu0 %v75_v27  ;;  %391 = vmatprep.subr.mxu1 %v253_v49 }
  0x44   :  { %141 = vmatpush1.msra.mxu0 %v74_v28  ;;  %392 = vmatpush3.msra.mxu1 %v237_v50 }
  0x45   :  { %142 = vmatprep.subr.mxu0 %v73_v29  ;;  %393 = vmatprep.subr.mxu1 %v252_v51 }
  0x46   :  { %143 = vmatpush1.msra.mxu0 %v72_v30  ;;  %394 = vmatpush3.msra.mxu1 %v236_v52 }
  0x47   :  { %144 = vmatprep.subr.mxu0 %v71_v31  ;;  %395 = vmatprep.subr.mxu1 %v251_v53 }
  0x48   :  { %145 = vmatpush1.msra.mxu0 %v70_v32  ;;  %396 = vmatpush3.msra.mxu1 %v235_v54 }
  0x49   :  { %179 = vmatmul.mubr.f32.vlgmr.msra.gmra.mxu0 %v573_v33  ;;  %397 = vmatprep.subr.mxu1 %v250_v55 }
  0x4a   :  { %184 = vmatprep.mubr.f32.mxu0 %v525_v0  ;;  %398 = vmatpush3.msra.mxu1 %v234_v56  ;;  %v230_v0 = vld [vmem:[#allocation8 + $0x8] sm:$0xff] }
  0x4b   :  { %399 = vmatprep.subr.mxu1 %v249_v57 }
  0x4c   :  { %400 = vmatpush3.msra.mxu1 %v233_v58  ;;  %v376_v58 = vld [vmem:[%s598_s4] ss:$0 sm:$0xff] }
  0x4d   :  { %185 = vmatmul.mubr.f32.gmra.mxu0 %v577_v34  ;;  %401 = vmatprep.subr.mxu1 %v248_v59 }
  0x4e   :  { %402 = vmatpush3.msra.mxu1 %v232_v60 }
  0x4f   :  { %403 = vmatprep.subr.mxu1 %v247_v61 }
  0x50   :  { %404 = vmatpush3.msra.mxu1 %v231_v62 }
  0x51   :  { %405 = vmatprep.subr.mxu1 %v246_v63 }
  0x52   :  { %406 = vmatpush3.msra.mxu1 %v230_v0 }
  0x53   :  { %407 = vmatprep.subr.mxu1 %v245_v1 }
  0x54   :  { %408 = vmatpush3.msra.mxu1 %v229_v2 }
 0x109   :  { %v180_v10 = vpop.f32.mrf.mxu0 }
 0x10a   :  { %v181_v11 = vadd.f32 %v180_v10, %v107_v8 }
 0x10b   :  { %v182_v12 = vpop.f32.mrf.mxu0 }
 0x10c   :  { %v191_v13 = vmul.f32 %v181_v11, %v181_v11  ;;  %v183_v14 = vadd.f32 %v182_v12, %v111_v9 }
 0x10d   :  { %v186_v15 = vpop.f32.mrf.mxu0 }
 0x10e   :  { %v195_v16 = vmul.f32 %v191_v13, %v181_v11  ;;  %v192_v17 = vmul.f32 %v183_v14, %v183_v14  ;;  %v187_v18 = vadd.f32 %v186_v15, %v107_v8 }
 0x10f   :  { %v188_v19 = vpop.f32.mrf.mxu0 }
 0x110   :  { %v199_v20 = vmul.f32 0.044715, %v195_v16  ;;  %v196_v21 = vmul.f32 %v192_v17, %v183_v14  ;;  %v193_v22 = vmul.f32 %v187_v18, %v187_v18  ;;  %v189_v23 = vadd.f32 %v188_v19, %v111_v9 }
 0x112   :  { %v203_v24 = vadd.f32 %v199_v20, %v181_v11  ;;  %v197_v25 = vmul.f32 %v193_v22, %v187_v18  ;;  %v194_v26 = vmul.f32 %v189_v23, %v189_v23  ;;  %v200_v27 = vmul.f32 0.044715, %v196_v21 }
 0x114   :  { %v207_v28 = vmul.f32 0.7978846, %v203_v24  ;;  %v201_v29 = vmul.f32 0.044715, %v197_v25  ;;  %v198_v30 = vmul.f32 %v194_v26, %v189_v23  ;;  %v204_v31 = vadd.f32 %v200_v27, %v183_v14 }
 0x116   :  { %424 = vtanh.f32 %v207_v28  ;;  %v205_v32 = vadd.f32 %v201_v29, %v187_v18  ;;  %v202_v35 = vmul.f32 0.044715, %v198_v30  ;;  %v208_v36 = vmul.f32 0.7978846, %v204_v31 }
 0x118   :  { %v209_v37 = vmul.f32 0.7978846, %v205_v32  ;;  %v206_v38 = vadd.f32 %v202_v35, %v189_v23  ;;  %426 = vtanh.f32 %v208_v36 }
 0x11a   :  { %428 = vtanh.f32 %v209_v37  ;;  %v210_v39 = vmul.f32 0.7978846, %v206_v38 }
 0x11c   :  { %430 = vtanh.f32 %v210_v39 }
 0x123   :  { %v425_v40 = vpop.eup %424 }
 0x124   :  { %v215_v41 = vadd.f32 1.0, %v425_v40 }
 0x125   :  { %v427_v42 = vpop.eup %426 }
 0x126   :  { %v216_v43 = vadd.f32 1.0, %v427_v42  ;;  %v219_v45 = vmul.f32 0.5, %v215_v41 }
 0x127   :  { %v429_v44 = vpop.eup %428 }
 0x128   :  { %v220_v46 = vmul.f32 0.5, %v216_v43  ;;  %v217_v47 = vadd.f32 1.0, %v429_v44  ;;  %v223_v51 = vmul.f32 %v219_v45, %v181_v11 }
 0x129   :  { %v431_v48 = vpop.eup %430 }
 0x12a   :  { %v224_v49 = vmul.f32 %v220_v46, %v183_v14  ;;  %v218_v50 = vadd.f32 1.0, %v431_v48  ;;  %v221_v52 = vmul.f32 0.5, %v217_v47 }
 0x12c   :  { %325 = vmatprep.mubr.f32.mxu1 %v224_v49  ;;  %v222_v53 = vmul.f32 0.5, %v218_v50  ;;  %v225_v55 = vmul.f32 %v221_v52, %v187_v18 }
 0x12d   :  { %326 = vmatmul.mubr.f32.vlgmr.msra.gmra.mxu1 %v223_v51 }
 0x12e   :  { %v226_v54 = vmul.f32 %v222_v53, %v189_v23 }
 0x130   :  { %330 = vmatprep.mubr.f32.mxu1 %v226_v54 }
 0x131   :  { %331 = vmatmul.mubr.f32.gmra.mxu1 %v225_v55 }
 0x1ed   :  { %v409_v56 = vpop.f32.mrf.mxu1 }
 0x1ef   :  { %v410_v57 = vpop.f32.mrf.mxu1 }
 0x1f0   :  { %v411_v59 = vadd.f32 %v410_v57, %v409_v56 }
 0x1f1   :  { %v412_v60 = vpop.f32.mrf.mxu1 }
 0x1f2   :  { %v352_v61 = vadd.f32 %v411_v59, %v376_v58 }
 0x1f3   :  { %v413_v62 = vpop.f32.mrf.mxu1 }
 0x1f4   :  { %v354_v63 = vadd.f32 %v352_v61, %v573_v33  ;;  %v414_v0 = vadd.f32 %v413_v62, %v412_v60 }
 0x1f6   :  { %356 = vst [vmem:[#allocation9] sm:$0xff] %v354_v63  ;;  %v353_v1 = vadd.f32 %v414_v0, %v376_v58 }
 0x1f8   :  { %v355_v2 = vadd.f32 %v353_v1, %v577_v34 }
 0x1fa   :  { %357 = vst [vmem:[#allocation9 + $0x8] sm:$0xff] %v355_v2 }
 0x1fb   :  { %503 = shalt.err (!%p500_p5)
}
 0x1fc   :  { %369 = dma.vmem_to_hbm [thread:$0]  %s364_s13, 256, %s599_s5, [#allocation5], %s522_s28, %s522_s28, %s523_s29  }
 0x1fd   :  { %516 = dma.done.wait [#allocation5], 256  }
 0x1fe   :  { %517 = vsyncadd [#allocation5], 4294967040 }
 0x1ff   :  { %373 = vsyncpa [#allocation4], 1 }
 0x200   :  { %374 = vsyncpa [#allocation7], 1 }
 0x201   :  { %375 = vsyncpa [#allocation5], 1 }

// kernel: tpu_custom_call.1
= control target key start
LH: loop header
LB: loop body
LE: loop exit
PB: predicated region body
PF: predicated region fallthrough
CT: control target
= control target key end

     0   :  { %10 = vsyncpa [#allocation4], 0  ;;  %s594_s0 = inlined_call_operand.hbm [shape: f32[16,128], index: 0, kind: input, shape index: {}]   ;;  %s595_s1 = inlined_call_operand.hbm [shape: f32[128,256], index: 1, kind: input, shape index: {}]   ;;  %s596_s2 = inlined_call_operand.vmem [shape: f32[1,256], index: 2, kind: input, shape index: {}]   ;;  %s597_s3 = inlined_call_operand.hbm [shape: f32[256,128], index: 3, kind: input, shape index: {}]   ;;  %s598_s4 = inlined_call_operand.vmem [shape: f32[1,128], index: 4, kind: input, shape index: {}]   ;;  %s599_s5 = inlined_call_operand.hbm [shape: f32[16,128], index: 5, kind: output, shape index: {}]  }
   0x1   :  { %11 = vsyncpa [#allocation7], 0 }
   0x2   :  { %12 = vsyncpa [#allocation5], 0  ;;  %s518_s18 = smov [#allocation6]  }
   0x3   :  { %s30_s19 = sshll.u32 %s518_s18, 4  ;;  %s31_s19 = int_to_ptr.vmem [resolvable:$true] %s30_s19 }
   0x4   :  { %s440_s20 = scalar_lea.vmem %s31_s19, 4096  ;;  %p445_p1 = scmp.lt.s32.totalorder %s31_s19, %s31_s19 }
   0x5   :  { %p441_p0 = scmp.ne.s32.totalorder %s31_s19, %s440_s20  ;;  %p446_p2 = scmp.lt.s32.totalorder %s440_s20, %s440_s20 }
   0x7   :  { %p447_p3 = por %p446_p2, %p445_p1 }
   0x9   :  { %p448_p4 = pnand %p447_p3, %p441_p0 }
   0xb   :  { %451 = shalt.err (!%p448_p4)
}
   0xc   :  { %s519_s21 = smov 256   ;;  %s520_s22 = smov 16  }
   0xd   :  { %36 = dma.hbm_to_vmem [thread:$0]  %s595_s1, 4096, %s31_s19, [#allocation7], %s519_s21, %s519_s21, %s520_s22  }
   0xe   :  { %s521_s25 = smov [#allocation3]  }
   0xf   :  { %s18_s26 = sshll.u32 %s521_s25, 4  ;;  %s19_s26 = int_to_ptr.vmem [resolvable:$true] %s18_s26 }
  0x10   :  { %s460_s27 = scalar_lea.vmem %s19_s26, 256  ;;  %p465_p6 = scmp.lt.s32.totalorder %s19_s26, %s19_s26 }
  0x11   :  { %p461_p5 = scmp.ne.s32.totalorder %s19_s26, %s460_s27  ;;  %p466_p7 = scmp.lt.s32.totalorder %s460_s27, %s460_s27 }
  0x13   :  { %p467_p8 = por %p466_p7, %p465_p6 }
  0x15   :  { %p468_p9 = pnand %p467_p8, %p461_p5 }
  0x17   :  { %471 = shalt.err (!%p468_p9)
}
  0x18   :  { %s522_s28 = smov 128   ;;  %s523_s29 = smov 8  }
  0x19   :  { %24 = dma.hbm_to_vmem [thread:$0]  %s594_s0, 256, %s19_s26, [#allocation4], %s522_s28, %s522_s28, %s523_s29  }
  0x1a   :  { %s524_s1 = smov [#allocation8]  }
  0x1b   :  { %s44_s7 = sshll.u32 %s524_s1, 4  ;;  %s45_s7 = int_to_ptr.vmem [resolvable:$true] %s44_s7 }
  0x1c   :  { %s480_s8 = scalar_lea.vmem %s45_s7, 4096  ;;  %p485_p11 = scmp.lt.s32.totalorder %s45_s7, %s45_s7 }
  0x1d   :  { %p481_p10 = scmp.ne.s32.totalorder %s45_s7, %s480_s8  ;;  %p486_p12 = scmp.lt.s32.totalorder %s480_s8, %s480_s8 }
  0x1f   :  { %p487_p13 = por %p486_p12, %p485_p11 }
  0x21   :  { %p488_p0 = pnand %p487_p13, %p481_p10 }
  0x23   :  { %491 = shalt.err (!%p488_p0)
}
  0x24   :  { %50 = dma.hbm_to_vmem [thread:$0]  %s597_s3, 4096, %s45_s7, [#allocation7], %s522_s28, %s522_s28, %s523_s29  }
  0x25   :  { %512 = dma.done.wait [#allocation4], 256  }
  0x26   :  { %513 = vsyncadd [#allocation4], 4294967040 }
  0x27   :  { %514 = dma.done.wait [#allocation7], 8192  }
  0x28   :  { %515 = vsyncadd [#allocation7], 4294959104  ;;  %v525_v0 = vmov 0.0   ;;  %v101_v1 = vld [vmem:[#allocation6 + $0xf8] sm:$0xff]  ;;  %v100_v2 = vld [vmem:[#allocation6 + $0xf0] sm:$0xff]  ;;  %s526_s12 = smov [#allocation9]  }
  0x29   :  { %178 = vmatprep.mubr.f32.mxu0 %v525_v0  ;;  %v99_v3 = vld [vmem:[#allocation6 + $0xe8] sm:$0xff]  ;;  %114 = vmatprep.subr.mxu0 %v101_v1  ;;  %v98_v4 = vld [vmem:[#allocation6 + $0xe0] sm:$0xff]  ;;  %v97_v5 = vld [vmem:[#allocation6 + $0xd8] sm:$0xff]  ;;  %s363_s13 = sshll.u32 %s526_s12, 4  ;;  %s364_s13 = int_to_ptr.vmem [resolvable:$true] %s363_s13 }
  0x2a   :  { %115 = vmatpush1.msra.mxu0 %v100_v2  ;;  %v96_v6 = vld [vmem:[#allocation6 + $0xd0] sm:$0xff]  ;;  %v95_v7 = vld [vmem:[#allocation6 + $0xc8] sm:$0xff]  ;;  %v94_v8 = vld [vmem:[#allocation6 + $0xc0] sm:$0xff]  ;;  %s492_s14 = scalar_lea.vmem %s364_s13, 256  ;;  %p497_p2 = scmp.lt.s32.totalorder %s364_s13, %s364_s13 }
  0x2b   :  { %116 = vmatprep.subr.mxu0 %v99_v3  ;;  %v93_v9 = vld [vmem:[#allocation6 + $0xb8] sm:$0xff]  ;;  %v92_v10 = vld [vmem:[#allocation6 + $0xb0] sm:$0xff]  ;;  %v91_v11 = vld [vmem:[#allocation6 + $0xa8] sm:$0xff]  ;;  %v104_v3 = vlaneseq  ;;  %p493_p1 = scmp.ne.s32.totalorder %s364_s13, %s492_s14  ;;  %p498_p3 = scmp.lt.s32.totalorder %s492_s14, %s492_s14 }
  0x2c   :  { %117 = vmatpush1.msra.mxu0 %v98_v4  ;;  %v90_v12 = vld [vmem:[#allocation6 + $0xa0] sm:$0xff]  ;;  %v89_v13 = vld [vmem:[#allocation6 + $0x98] sm:$0xff]  ;;  %v88_v14 = vld [vmem:[#allocation6 + $0x90] sm:$0xff] }
  0x2d   :  { %118 = vmatprep.subr.mxu0 %v97_v5  ;;  %v87_v15 = vld [vmem:[#allocation6 + $0x88] sm:$0xff]  ;;  %v86_v16 = vld [vmem:[#allocation6 + $0x80] sm:$0xff]  ;;  %v85_v17 = vld [vmem:[#allocation6 + $0x78] sm:$0xff]  ;;  %v105_v4 = vshrl.u32 %v104_v3, 7  ;;  %p499_p4 = por %p498_p3, %p497_p2 }
  0x2e   :  { %119 = vmatpush1.msra.mxu0 %v96_v6  ;;  %v84_v18 = vld [vmem:[#allocation6 + $0x70] sm:$0xff]  ;;  %v83_v19 = vld [vmem:[#allocation6 + $0x68] sm:$0xff]  ;;  %v82_v20 = vld [vmem:[#allocation6 + $0x60] sm:$0xff] }
  0x2f   :  { %120 = vmatprep.subr.mxu0 %v95_v7  ;;  %v81_v21 = vld [vmem:[#allocation6 + $0x58] sm:$0xff]  ;;  %v80_v22 = vld [vmem:[#allocation6 + $0x50] sm:$0xff]  ;;  %v79_v23 = vld [vmem:[#allocation6 + $0x48] sm:$0xff]  ;;  %v106_v5 = vsub.s32 0, %v105_v4  ;;  %v110_v7 = vsub.s32 1, %v105_v4  ;;  %p500_p5 = pnand %p499_p4, %p493_p1 }
  0x30   :  { %121 = vmatpush1.msra.mxu0 %v94_v8  ;;  %v78_v24 = vld [vmem:[#allocation6 + $0x40] sm:$0xff]  ;;  %v77_v25 = vld [vmem:[#allocation6 + $0x38] sm:$0xff]  ;;  %v76_v26 = vld [vmem:[#allocation6 + $0x30] sm:$0xff] }
  0x31   :  { %122 = vmatprep.subr.mxu0 %v93_v9  ;;  %v75_v27 = vld [vmem:[#allocation6 + $0x28] sm:$0xff]  ;;  %v74_v28 = vld [vmem:[#allocation6 + $0x20] sm:$0xff]  ;;  %v73_v29 = vld [vmem:[#allocation6 + $0x18] sm:$0xff] }
  0x32   :  { %123 = vmatpush1.msra.mxu0 %v92_v10  ;;  %v72_v30 = vld [vmem:[#allocation6 + $0x10] sm:$0xff]  ;;  %v71_v31 = vld [vmem:[#allocation6 + $0x8] sm:$0xff]  ;;  %v70_v32 = vld [vmem:[#allocation6] sm:$0xff] }
  0x33   :  { %124 = vmatprep.subr.mxu0 %v91_v11  ;;  %v573_v33 = vld [vmem:[#allocation3] sm:$0xff]  ;;  %v577_v34 = vld [vmem:[#allocation3 + $0x8] sm:$0xff]  ;;  %v258_v39 = vld [vmem:[#allocation8 + $0xe8] sm:$0xff] }
  0x34   :  { %125 = vmatpush1.msra.mxu0 %v90_v12  ;;  %v260_v35 = vld [vmem:[#allocation8 + $0xf8] sm:$0xff]  ;;  %v259_v37 = vld [vmem:[#allocation8 + $0xf0] sm:$0xff]  ;;  %v242_v40 = vld [vmem:[#allocation8 + $0x68] sm:$0xff] }
  0x35   :  { %126 = vmatprep.subr.mxu0 %v89_v13  ;;  %377 = vmatprep.subr.mxu1 %v260_v35  ;;  %v244_v36 = vld [vmem:[#allocation8 + $0x78] sm:$0xff]  ;;  %v243_v38 = vld [vmem:[#allocation8 + $0x70] sm:$0xff]  ;;  %v257_v41 = vld [vmem:[#allocation8 + $0xe0] sm:$0xff] }
  0x36   :  { %127 = vmatpush1.msra.mxu0 %v88_v14  ;;  %378 = vmatpush3.msra.mxu1 %v244_v36  ;;  %v241_v42 = vld [vmem:[#allocation8 + $0x60] sm:$0xff]  ;;  %v256_v43 = vld [vmem:[#allocation8 + $0xd8] sm:$0xff]  ;;  %v255_v45 = vld [vmem:[#allocation8 + $0xd0] sm:$0xff] }
  0x37   :  { %128 = vmatprep.subr.mxu0 %v87_v15  ;;  %379 = vmatprep.subr.mxu1 %v259_v37  ;;  %v240_v44 = vld [vmem:[#allocation8 + $0x58] sm:$0xff]  ;;  %v239_v46 = vld [vmem:[#allocation8 + $0x50] sm:$0xff]  ;;  %v254_v47 = vld [vmem:[#allocation8 + $0xc8] sm:$0xff] }
  0x38   :  { %129 = vmatpush1.msra.mxu0 %v86_v16  ;;  %380 = vmatpush3.msra.mxu1 %v243_v38  ;;  %v238_v48 = vld [vmem:[#allocation8 + $0x48] sm:$0xff]  ;;  %v253_v49 = vld [vmem:[#allocation8 + $0xc0] sm:$0xff]  ;;  %v252_v51 = vld [vmem:[#allocation8 + $0xb8] sm:$0xff] }
  0x39   :  { %130 = vmatprep.subr.mxu0 %v85_v17  ;;  %381 = vmatprep.subr.mxu1 %v258_v39  ;;  %v237_v50 = vld [vmem:[#allocation8 + $0x40] sm:$0xff]  ;;  %v236_v52 = vld [vmem:[#allocation8 + $0x38] sm:$0xff]  ;;  %v251_v53 = vld [vmem:[#allocation8 + $0xb0] sm:$0xff] }
  0x3a   :  { %131 = vmatpush1.msra.mxu0 %v84_v18  ;;  %382 = vmatpush3.msra.mxu1 %v242_v40  ;;  %v235_v54 = vld [vmem:[#allocation8 + $0x30] sm:$0xff]  ;;  %v250_v55 = vld [vmem:[#allocation8 + $0xa8] sm:$0xff]  ;;  %v249_v57 = vld [vmem:[#allocation8 + $0xa0] sm:$0xff] }
  0x3b   :  { %132 = vmatprep.subr.mxu0 %v83_v19  ;;  %383 = vmatprep.subr.mxu1 %v257_v41  ;;  %v234_v56 = vld [vmem:[#allocation8 + $0x28] sm:$0xff]  ;;  %v233_v58 = vld [vmem:[#allocation8 + $0x20] sm:$0xff]  ;;  %v248_v59 = vld [vmem:[#allocation8 + $0x98] sm:$0xff] }
  0x3c   :  { %133 = vmatpush1.msra.mxu0 %v82_v20  ;;  %384 = vmatpush3.msra.mxu1 %v241_v42  ;;  %v232_v60 = vld [vmem:[#allocation8 + $0x18] sm:$0xff]  ;;  %v247_v61 = vld [vmem:[#allocation8 + $0x90] sm:$0xff]  ;;  %v246_v63 = vld [vmem:[#allocation8 + $0x88] sm:$0xff] }
  0x3d   :  { %134 = vmatprep.subr.mxu0 %v81_v21  ;;  %385 = vmatprep.subr.mxu1 %v256_v43  ;;  %v231_v62 = vld [vmem:[#allocation8 + $0x10] sm:$0xff]  ;;  %v245_v1 = vld [vmem:[#allocation8 + $0x80] sm:$0xff] }
  0x3e   :  { %135 = vmatpush1.msra.mxu0 %v80_v22  ;;  %386 = vmatpush3.msra.mxu1 %v240_v44  ;;  %v229_v2 = vld [vmem:[#allocation8] sm:$0xff]  ;;  %v102_v6 = vld [vmem:[%s596_s2] sm:$0x3] }
  0x3f   :  { %136 = vmatprep.subr.mxu0 %v79_v23  ;;  %387 = vmatprep.subr.mxu1 %v255_v45  ;;  %v107_v8 = vrot.slane %v102_v6, %v106_v5  ;;  %v111_v9 = vrot.slane %v102_v6, %v110_v7 }
  0x40   :  { %137 = vmatpush1.msra.mxu0 %v78_v24  ;;  %388 = vmatpush3.msra.mxu1 %v239_v46 }
  0x41   :  { %138 = vmatprep.subr.mxu0 %v77_v25  ;;  %389 = vmatprep.subr.mxu1 %v254_v47 }
  0x42   :  { %139 = vmatpush1.msra.mxu0 %v76_v26  ;;  %390 = vmatpush3.msra.mxu1 %v238_v48 }
  0x43   :  { %140 = vmatprep.subr.mxu0 %v75_v27  ;;  %391 = vmatprep.subr.mxu1 %v253_v49 }
  0x44   :  { %141 = vmatpush1.msra.mxu0 %v74_v28  ;;  %392 = vmatpush3.msra.mxu1 %v237_v50 }
  0x45   :  { %142 = vmatprep.subr.mxu0 %v73_v29  ;;  %393 = vmatprep.subr.mxu1 %v252_v51 }
  0x46   :  { %143 = vmatpush1.msra.mxu0 %v72_v30  ;;  %394 = vmatpush3.msra.mxu1 %v236_v52 }
  0x47   :  { %144 = vmatprep.subr.mxu0 %v71_v31  ;;  %395 = vmatprep.subr.mxu1 %v251_v53 }
  0x48   :  { %145 = vmatpush1.msra.mxu0 %v70_v32  ;;  %396 = vmatpush3.msra.mxu1 %v235_v54 }
  0x49   :  { %179 = vmatmul.mubr.f32.vlgmr.msra.gmra.mxu0 %v573_v33  ;;  %397 = vmatprep.subr.mxu1 %v250_v55 }
  0x4a   :  { %184 = vmatprep.mubr.f32.mxu0 %v525_v0  ;;  %398 = vmatpush3.msra.mxu1 %v234_v56  ;;  %v230_v0 = vld [vmem:[#allocation8 + $0x8] sm:$0xff] }
  0x4b   :  { %399 = vmatprep.subr.mxu1 %v249_v57 }
  0x4c   :  { %400 = vmatpush3.msra.mxu1 %v233_v58  ;;  %v376_v58 = vld [vmem:[%s598_s4] ss:$0 sm:$0xff] }
  0x4d   :  { %185 = vmatmul.mubr.f32.gmra.mxu0 %v577_v34  ;;  %401 = vmatprep.subr.mxu1 %v248_v59 }
  0x4e   :  { %402 = vmatpush3.msra.mxu1 %v232_v60 }
  0x4f   :  { %403 = vmatprep.subr.mxu1 %v247_v61 }
  0x50   :  { %404 = vmatpush3.msra.mxu1 %v231_v62 }
  0x51   :  { %405 = vmatprep.subr.mxu1 %v246_v63 }
  0x52   :  { %406 = vmatpush3.msra.mxu1 %v230_v0 }
  0x53   :  { %407 = vmatprep.subr.mxu1 %v245_v1 }
  0x54   :  { %408 = vmatpush3.msra.mxu1 %v229_v2 }
 0x109   :  { %v180_v10 = vpop.f32.mrf.mxu0 }
 0x10a   :  { %v181_v11 = vadd.f32 %v180_v10, %v107_v8 }
 0x10b   :  { %v182_v12 = vpop.f32.mrf.mxu0 }
 0x10c   :  { %v191_v13 = vmul.f32 %v181_v11, %v181_v11  ;;  %v183_v14 = vadd.f32 %v182_v12, %v111_v9 }
 0x10d   :  { %v186_v15 = vpop.f32.mrf.mxu0 }
 0x10e   :  { %v195_v16 = vmul.f32 %v191_v13, %v181_v11  ;;  %v192_v17 = vmul.f32 %v183_v14, %v183_v14  ;;  %v187_v18 = vadd.f32 %v186_v15, %v107_v8 }
 0x10f   :  { %v188_v19 = vpop.f32.mrf.mxu0 }
 0x110   :  { %v199_v20 = vmul.f32 0.044715, %v195_v16  ;;  %v196_v21 = vmul.f32 %v192_v17, %v183_v14  ;;  %v193_v22 = vmul.f32 %v187_v18, %v187_v18  ;;  %v189_v23 = vadd.f32 %v188_v19, %v111_v9 }
 0x112   :  { %v203_v24 = vadd.f32 %v199_v20, %v181_v11  ;;  %v197_v25 = vmul.f32 %v193_v22, %v187_v18  ;;  %v194_v26 = vmul.f32 %v189_v23, %v189_v23  ;;  %v200_v27 = vmul.f32 0.044715, %v196_v21 }
 0x114   :  { %v207_v28 = vmul.f32 0.7978846, %v203_v24  ;;  %v201_v29 = vmul.f32 0.044715, %v197_v25  ;;  %v198_v30 = vmul.f32 %v194_v26, %v189_v23  ;;  %v204_v31 = vadd.f32 %v200_v27, %v183_v14 }
 0x116   :  { %424 = vtanh.f32 %v207_v28  ;;  %v205_v32 = vadd.f32 %v201_v29, %v187_v18  ;;  %v202_v35 = vmul.f32 0.044715, %v198_v30  ;;  %v208_v36 = vmul.f32 0.7978846, %v204_v31 }
 0x118   :  { %v209_v37 = vmul.f32 0.7978846, %v205_v32  ;;  %v206_v38 = vadd.f32 %v202_v35, %v189_v23  ;;  %426 = vtanh.f32 %v208_v36 }
 0x11a   :  { %428 = vtanh.f32 %v209_v37  ;;  %v210_v39 = vmul.f32 0.7978846, %v206_v38 }
 0x11c   :  { %430 = vtanh.f32 %v210_v39 }
 0x123   :  { %v425_v40 = vpop.eup %424 }
 0x124   :  { %v215_v41 = vadd.f32 1.0, %v425_v40 }
 0x125   :  { %v427_v42 = vpop.eup %426 }
 0x126   :  { %v216_v43 = vadd.f32 1.0, %v427_v42  ;;  %v219_v45 = vmul.f32 0.5, %v215_v41 }
 0x127   :  { %v429_v44 = vpop.eup %428 }
 0x128   :  { %v220_v46 = vmul.f32 0.5, %v216_v43  ;;  %v217_v47 = vadd.f32 1.0, %v429_v44  ;;  %v223_v51 = vmul.f32 %v219_v45, %v181_v11 }
 0x129   :  { %v431_v48 = vpop.eup %430 }
 0x12a   :  { %v224_v49 = vmul.f32 %v220_v46, %v183_v14  ;;  %v218_v50 = vadd.f32 1.0, %v431_v48  ;;  %v221_v52 = vmul.f32 0.5, %v217_v47 }
 0x12c   :  { %325 = vmatprep.mubr.f32.mxu1 %v224_v49  ;;  %v222_v53 = vmul.f32 0.5, %v218_v50  ;;  %v225_v55 = vmul.f32 %v221_v52, %v187_v18 }
 0x12d   :  { %326 = vmatmul.mubr.f32.vlgmr.msra.gmra.mxu1 %v223_v51 }
 0x12e   :  { %v226_v54 = vmul.f32 %v222_v53, %v189_v23 }
 0x130   :  { %330 = vmatprep.mubr.f32.mxu1 %v226_v54 }
 0x131   :  { %331 = vmatmul.mubr.f32.gmra.mxu1 %v225_v55 }
 0x1ed   :  { %v409_v56 = vpop.f32.mrf.mxu1 }
 0x1ef   :  { %v410_v57 = vpop.f32.mrf.mxu1 }
 0x1f0   :  { %v411_v59 = vadd.f32 %v410_v57, %v409_v56 }
 0x1f1   :  { %v412_v60 = vpop.f32.mrf.mxu1 }
 0x1f2   :  { %v352_v61 = vadd.f32 %v411_v59, %v376_v58 }
 0x1f3   :  { %v413_v62 = vpop.f32.mrf.mxu1 }
 0x1f4   :  { %v354_v63 = vadd.f32 %v352_v61, %v573_v33  ;;  %v414_v0 = vadd.f32 %v413_v62, %v412_v60 }
 0x1f6   :  { %356 = vst [vmem:[#allocation9] sm:$0xff] %v354_v63  ;;  %v353_v1 = vadd.f32 %v414_v0, %v376_v58 }
 0x1f8   :  { %v355_v2 = vadd.f32 %v353_v1, %v577_v34 }
 0x1fa   :  { %357 = vst [vmem:[#allocation9 + $0x8] sm:$0xff] %v355_v2 }
 0x1fb   :  { %503 = shalt.err (!%p500_p5)
}
 0x1fc   :  { %369 = dma.vmem_to_hbm [thread:$0]  %s364_s13, 256, %s599_s5, [#allocation5], %s522_s28, %s522_s28, %s523_s29  }
 0x1fd   :  { %516 = dma.done.wait [#allocation5], 256  }
 0x1fe   :  { %517 = vsyncadd [#allocation5], 4294967040 }
 0x1ff   :  { %373 = vsyncpa [#allocation4], 1 }
 0x200   :  { %374 = vsyncpa [#allocation7], 1 }
 0x201   :  { %375 = vsyncpa [#allocation5], 1 }

</bundles_post_ra>
